<compile_context>
chip_gen: v6e
topology: v6e:2x2x1
jax: 0.10.0
libtpu: 0.0.40
codegen_flags: <defaults>
</compile_context>

<pallas_src>
import math
import functools

import jax
import jax.numpy as jnp
from jax import lax
from jax.experimental import pallas as pl
from jax.experimental.pallas import tpu as pltpu


def _pe_add_kernel(x_ref, invf_ref, phase_ref, o_ref, *, tile_s):
    """x_ref / o_ref: (tile_s, B*D).  invf_ref / phase_ref: (1, B*D) float32."""
    i = pl.program_id(0)
    # Global sequence position of every row in this block.
    row = lax.broadcasted_iota(jnp.int32, o_ref.shape, 0)
    pos = (i * tile_s + row).astype(jnp.float32)
    # pe[s, b*D + d] = sin(pos * inv_freq[d] + phase[d]); phase is 0 on even
    # feature dims (sin lanes) and pi/2 on odd ones (cos lanes) -> a single
    # full-width sin instead of sin + cos + select.
    angle = pos * invf_ref[...] + phase_ref[...]
    pe = jnp.sin(angle)
    # Add in f32, cast once to the output dtype.
    o_ref[...] = (x_ref[...].astype(jnp.float32) + pe).astype(o_ref.dtype)


def _choose_tile_s(seq_len, row_bytes, target_block_bytes=2 * 1024 * 1024):
    """~2 MiB blocks (safe for v7x VMEM with double buffering), sublane-aligned."""
    if seq_len <= 8:
        return seq_len
    t = (target_block_bytes // max(row_bytes, 1)) // 8 * 8
    t = max(8, t)
    return min(seq_len, t)


def positional_encoding(x, *, tile_s=None):
    """x: (S, B, D) -> x + sinusoidal positional encoding, same shape/dtype."""
    S, B, D = x.shape
    BD = B * D

    # Per-feature frequency / phase, precomputed once (the PyTorch module does the
    # equivalent table precompute in __init__, outside forward).
    d = jnp.arange(D, dtype=jnp.int32)
    two_k = ((d // 2) * 2).astype(jnp.float32)
    inv_freq = jnp.exp(two_k * (-math.log(10000.0) / D))        # (D,)
    phase = (d % 2).astype(jnp.float32) * (math.pi / 2.0)       # (D,)
    # Match the flattened (S, B*D) layout: lane index b*D + d -> feature d.
    inv_freq_wide = jnp.tile(inv_freq, (B,)).reshape(1, BD)
    phase_wide = jnp.tile(phase, (B,)).reshape(1, BD)

    itemsize = jnp.dtype(x.dtype).itemsize
    if tile_s is None:
        tile_s = _choose_tile_s(S, BD * itemsize)
    grid = (pl.cdiv(S, tile_s),)

    x2 = x.reshape(S, BD)  # free: merges contiguous trailing dims

    kernel = functools.partial(_pe_add_kernel, tile_s=tile_s)
    out2 = pl.pallas_call(
        kernel,
        out_shape=jax.ShapeDtypeStruct((S, BD), x.dtype),
        grid_spec=pltpu.PrefetchScalarGridSpec(
            num_scalar_prefetch=0,
            grid=grid,
            in_specs=[
                pl.BlockSpec((tile_s, BD), lambda i: (i, 0)),
                pl.BlockSpec((1, BD), lambda i: (0, 0)),
                pl.BlockSpec((1, BD), lambda i: (0, 0)),
            ],
            out_specs=pl.BlockSpec((tile_s, BD), lambda i: (i, 0)),
        ),
        compiler_params=pltpu.CompilerParams(
            dimension_semantics=("parallel",)),
        cost_estimate=pl.CostEstimate(
            flops=4 * S * BD,
            transcendentals=S * BD,
            bytes_accessed=2 * S * BD * itemsize + 2 * BD * 4),
    )(x2, inv_freq_wide, phase_wide)

    return out2.reshape(S, B, D)


def _reference(x):
    """Pure-JAX reference mirroring the PyTorch module exactly."""
    S, B, D = x.shape
    position = jnp.arange(S, dtype=jnp.float32)[:, None]              # (S, 1)
    div_term = jnp.exp(jnp.arange(0, D, 2, dtype=jnp.float32)
                       * (-math.log(10000.0) / D))                    # (D/2,)
    pe = jnp.zeros((S, D), jnp.float32)
    pe = pe.at[:, 0::2].set(jnp.sin(position * div_term))
    pe = pe.at[:, 1::2].set(jnp.cos(position * div_term))
    return (x.astype(jnp.float32) + pe[:, None, :]).astype(x.dtype)


if __name__ == "__main__":
    key = jax.random.PRNGKey(0)

    # Shapes consistent with the module: (seq_len, batch, d_model).
    S, B, D = 8, 2, 32
    x = jax.random.normal(key, (S, B, D), dtype=jnp.float32)

    out = jax.block_until_ready(positional_encoding(x))
    ref = _reference(x)
    assert out.shape == x.shape and out.dtype == x.dtype
    assert jnp.allclose(out, ref, atol=5e-5, rtol=1e-5)

    # Multi-step grid (exercises the pipelined tiling) and a partial last tile.
    for S2, t in ((48, 16), (40, 16)):
        x2 = jax.random.normal(jax.random.PRNGKey(1), (S2, B, D), jnp.float32)
        out2 = jax.block_until_ready(positional_encoding(x2, tile_s=t))
        assert jnp.allclose(out2, _reference(x2), atol=5e-5, rtol=1e-5)

    print("KERNEL_OK")
</pallas_src>

<mosaic_0001>
module attributes {stable_mosaic.version = 11 : i64} {
  func.func @_pe_add_kernel(%arg0: i32, %arg1: memref<8x64xf32, #tpu.memory_space<vmem>>, %arg2: memref<1x64xf32, #tpu.memory_space<vmem>>, %arg3: memref<1x64xf32, #tpu.memory_space<vmem>>, %arg4: memref<8x64xf32, #tpu.memory_space<vmem>>) attributes {dimension_semantics = [#tpu.dimension_semantics<parallel>], iteration_bounds = array<i64: 1>, scalar_prefetch = 0 : i64, scratch_operands = 0 : i64, tpu.core_type = #tpu.core_type<tc>, window_params = [{transform_indices = @transform_0, window_bounds = array<i64: 8, 64>}, {pipeline_mode = #tpu.pipeline_mode<synchronous>, transform_indices = @transform_1, window_bounds = array<i64: 1, 64>}, {pipeline_mode = #tpu.pipeline_mode<synchronous>, transform_indices = @transform_2, window_bounds = array<i64: 1, 64>}, {transform_indices = @transform_3, window_bounds = array<i64: 8, 64>}]} {
    %0 = tpu.iota {dimensions = array<i32: 0>} : vector<8x64xi32>
    %c8_i32 = arith.constant 8 : i32
    %1 = arith.muli %arg0, %c8_i32 : i32
    %2 = vector.broadcast %1 : i32 to vector<8x64xi32>
    %3 = arith.addi %2, %0 : vector<8x64xi32>
    %4 = arith.sitofp %3 : vector<8x64xi32> to vector<8x64xf32>
    %c0 = arith.constant 0 : index
    %c0_0 = arith.constant 0 : index
    %5 = vector.load %arg2[%c0, %c0_0] : memref<1x64xf32, #tpu.memory_space<vmem>>, vector<1x64xf32>
    %6 = vector.broadcast %5 : vector<1x64xf32> to vector<8x64xf32>
    %7 = arith.mulf %4, %6 : vector<8x64xf32>
    %c0_1 = arith.constant 0 : index
    %c0_2 = arith.constant 0 : index
    %8 = vector.load %arg3[%c0_1, %c0_2] : memref<1x64xf32, #tpu.memory_space<vmem>>, vector<1x64xf32>
    %9 = vector.broadcast %8 : vector<1x64xf32> to vector<8x64xf32>
    %10 = arith.addf %7, %9 : vector<8x64xf32>
    %11 = math.sin %10 : vector<8x64xf32>
    %c0_3 = arith.constant 0 : index
    %c0_4 = arith.constant 0 : index
    %12 = vector.load %arg1[%c0_3, %c0_4] : memref<8x64xf32, #tpu.memory_space<vmem>>, vector<8x64xf32>
    %13 = arith.addf %12, %11 : vector<8x64xf32>
    %c0_5 = arith.constant 0 : index
    %c0_6 = arith.constant 0 : index
    %14 = vector.load %arg4[%c0_5, %c0_6] : memref<8x64xf32, #tpu.memory_space<vmem>>, vector<8x64xf32>
    tpu.vector_store %arg4[%c0_5, %c0_6], %13 {strides = array<i32>} : memref<8x64xf32, #tpu.memory_space<vmem>>, vector<8x64xf32>,
    return
  }
  func.func @transform_0(%arg0: i32) -> (i32, i32) {
    %c0_i32 = arith.constant 0 : i32
    %c0_i32_0 = arith.constant 0 : i32
    return %arg0, %c0_i32 : i32, i32
  }
  func.func @transform_1(%arg0: i32) -> (i32, i32) {
    %c0_i32 = arith.constant 0 : i32
    %c0_i32_0 = arith.constant 0 : i32
    %c0_i32_1 = arith.constant 0 : i32
    return %c0_i32, %c0_i32_0 : i32, i32
  }
  func.func @transform_2(%arg0: i32) -> (i32, i32) {
    %c0_i32 = arith.constant 0 : i32
    %c0_i32_0 = arith.constant 0 : i32
    %c0_i32_1 = arith.constant 0 : i32
    return %c0_i32, %c0_i32_0 : i32, i32
  }
  func.func @transform_3(%arg0: i32) -> (i32, i32) {
    %c0_i32 = arith.constant 0 : i32
    %c0_i32_0 = arith.constant 0 : i32
    return %arg0, %c0_i32 : i32, i32
  }
}

</mosaic_0001>

<bundles_post_ra>
// kernel: tpu_custom_call.1
= control target key start
LH: loop header
LB: loop body
LE: loop exit
PB: predicated region body
PF: predicated region fallthrough
CT: control target
= control target key end

     0   :  { %8 = vsyncpa [#allocation3], 0  ;;  %s299_s0 = inlined_call_operand.hbm [shape: f32[8,64], index: 0, kind: input, shape index: {}]   ;;  %s300_s1 = inlined_call_operand.vmem [shape: f32[1,64], index: 1, kind: input, shape index: {}]   ;;  %s301_s2 = inlined_call_operand.vmem [shape: f32[1,64], index: 2, kind: input, shape index: {}]   ;;  %s302_s3 = inlined_call_operand.hbm [shape: f32[8,64], index: 3, kind: output, shape index: {}]  }
   0x1   :  { %9 = vsyncpa [#allocation4], 0  ;;  %s238_s12 = smov [#allocation2]  }
   0x2   :  { %s16_s13 = sshll.u32 %s238_s12, 4  ;;  %s17_s13 = int_to_ptr.vmem [resolvable:$true] %s16_s13 }
   0x3   :  { %s202_s14 = scalar_lea.vmem %s17_s13, 128  ;;  %p207_p1 = scmp.lt.s32.totalorder %s17_s13, %s17_s13 }
   0x4   :  { %p203_p0 = scmp.ne.s32.totalorder %s17_s13, %s202_s14  ;;  %p208_p2 = scmp.lt.s32.totalorder %s202_s14, %s202_s14 }
   0x6   :  { %p209_p3 = por %p208_p2, %p207_p1 }
   0x8   :  { %p210_p4 = pnand %p209_p3, %p203_p0 }
   0xa   :  { %213 = shalt.err (!%p210_p4)
}
   0xb   :  { %19 = dma.hbm_to_vmem [thread:$0]  %s299_s0, 128, %s17_s13, [#allocation3]  }
   0xc   :  { %234 = dma.done.wait [#allocation3], 128  }
   0xd   :  { %235 = vsyncadd [#allocation3], 4294967168  ;;  %v27_v0 = vlaneseq  ;;  %v172_v3 = vld [vmem:[%s300_s1] ss:$0 sm:$0xff]  ;;  %v239_v18 = vmov 683565275  }
   0xe   :  { %v173_v4 = vld [vmem:[%s301_s2] ss:$0 sm:$0xff]  ;;  %v240_v20 = vmov 2475754826   ;;  %v241_v22 = vmov 2131351028  }
   0xf   :  { %v28_v1 = vshrl.u32 %v27_v0, 7  ;;  %v242_v24 = vmov 2102212464   ;;  %v243_v26 = vmov 920167782   ;;  %s245_s0 = smov [#allocation5]  }
  0x10   :  { %v244_v33 = vmov 1326507024   ;;  %s163_s1 = sshll.u32 %s245_s0, 4  ;;  %vm155_vm13 = vcmask 523264   ;;  %s164_s1 = int_to_ptr.vmem [resolvable:$true] %s163_s1 }
  0x11   :  { %v32_v2 = vcvt.s32.f32 %v28_v1  ;;  %s214_s2 = scalar_lea.vmem %s164_s1, 128  ;;  %p219_p6 = scmp.lt.s32.totalorder %s164_s1, %s164_s1 }
  0x12   :  { %p215_p5 = scmp.ne.s32.totalorder %s164_s1, %s214_s2  ;;  %p220_p7 = scmp.lt.s32.totalorder %s214_s2, %s214_s2 }
  0x13   :  { %v40_v5 = vmul.f32 %v172_v3, %v32_v2 }
  0x14   :  { %p221_p8 = por %p220_p7, %p219_p6 }
  0x15   :  { %v275_v6 = vadd.f32 %v173_v4, %v40_v5 }
  0x16   :  { %p222_p9 = pnand %p221_p8, %p215_p5 }
  0x17   :  { %v52_v7 = vand.u32 2139095040, %v275_v6  ;;  %v49_v9 = vand.u32 2147483647, %v275_v6  ;;  %vm51_vm7 = vcmp.lt.s32.totalorder %v275_v6, 0  ;;  %vm141_vm12 = vweird.f32 %v275_v6 }
  0x19   :  { %v53_v8 = vshrl.u32 %v52_v7, 23  ;;  %v56_v12 = vand.u32 8388607, %v49_v9  ;;  %vm50_vm8 = vcmp.le.f32.partialorder %v49_v9, 0.7853982 }
  0x1b   :  { %v174_v10 = vadd.s32 4294967169, %v53_v8  ;;  %v57_v15 = vor.u32 8388608, %v56_v12 }
  0x1d   :  { %v59_v11 = vadd.s32 1, %v174_v10  ;;  %v97_v35 = vshll.u32 %v57_v15, 8 }
  0x1f   :  { %vm60_vm0 = vcmp.gt.s32.totalorder %v59_v11, 0 }
  0x20   :  { %v61_v13 = vsel %vm60_vm0, %v59_v11, 0 }
  0x21   :  { %v63_v14 = vand.u32 31, %v61_v13  ;;  %v62_v16 = vshrl.u32 %v61_v13, 5 }
  0x23   :  { %v64_v17 = vsub.s32 32, %v63_v14  ;;  %v66_v19 = vshll.u32 %v239_v18, %v63_v14  ;;  %v69_v21 = vshll.u32 %v240_v20, %v63_v14  ;;  %v72_v23 = vshll.u32 %v241_v22, %v63_v14 }
  0x24   :  { %v75_v25 = vshll.u32 %v242_v24, %v63_v14  ;;  %v78_v27 = vshll.u32 %v243_v26, %v63_v14  ;;  %vm81_vm1 = vcmp.lt.s32.totalorder %v62_v16, 1  ;;  %vm84_vm2 = vcmp.lt.s32.totalorder %v62_v16, 4 }
  0x25   :  { %v65_v28 = vshrl.u32 %v239_v18, %v64_v17  ;;  %v67_v29 = vshrl.u32 %v240_v20, %v64_v17  ;;  %v70_v30 = vshrl.u32 %v241_v22, %v64_v17  ;;  %v73_v31 = vshrl.u32 %v242_v24, %v64_v17 }
  0x26   :  { %v76_v32 = vshrl.u32 %v243_v26, %v64_v17  ;;  %v79_v34 = vshrl.u32 %v244_v33, %v64_v17  ;;  %vm82_vm3 = vcmp.lt.s32.totalorder %v62_v16, 2  ;;  %vm83_vm4 = vcmp.lt.s32.totalorder %v62_v16, 3  ;;  %v153_v33 = vld [vmem:[#allocation2] sm:$0xff] }
  0x27   :  { %v68_v36 = vor.u32 %v67_v29, %v66_v19  ;;  %v71_v37 = vor.u32 %v70_v30, %v69_v21  ;;  %v74_v38 = vor.u32 %v73_v31, %v72_v23 }
  0x28   :  { %v77_v39 = vor.u32 %v76_v32, %v75_v25  ;;  %v80_v40 = vor.u32 %v79_v34, %v78_v27 }
  0x29   :  { %v85_v41 = vsel %vm81_vm1, %v65_v28, %v68_v36  ;;  %v86_v42 = vsel %vm84_vm2, %v74_v38, 2102212464  ;;  %v89_v43 = vsel %vm81_vm1, %v68_v36, %v71_v37  ;;  %v93_v44 = vsel %vm81_vm1, %v71_v37, %v74_v38 }
  0x2a   :  { %v87_v45 = vsel %vm83_vm4, %v71_v37, %v86_v42  ;;  %v90_v46 = vsel %vm84_vm2, %v77_v39, 920167782  ;;  %v94_v47 = vsel %vm84_vm2, %v80_v40, 1326507024 }
  0x2b   :  { %v91_v48 = vsel %vm83_vm4, %v74_v38, %v90_v46  ;;  %v95_v49 = vsel %vm83_vm4, %v77_v39, %v94_v47  ;;  %v88_v50 = vsel %vm82_vm3, %v85_v41, %v87_v45 }
  0x2c   :  { %v92_v51 = vsel %vm82_vm3, %v89_v43, %v91_v48  ;;  %v96_v52 = vsel %vm82_vm3, %v93_v44, %v95_v49  ;;  %v104_v57 = vmul.u32 %v97_v35, %v88_v50 }
  0x2d   :  { %v281_v53 = vmul.u32.u64.low %v97_v35, %v96_v52  ;;  %v282_v54 = vmul.u32.u64.high %v97_v35, %v96_v52, %v281_v53  ;;  %v284_v55 = vmul.u32.u64.low %v97_v35, %v92_v51  ;;  %v285_v56 = vmul.u32.u64.high %v97_v35, %v92_v51, %v284_v55 }
  0x2f   :  { %vm106_vm5 = vc.u32 %v282_v54, %v284_v55  ;;  %v107_v58 = vadd.s32 1, %v285_v56  ;;  %v105_v5 = vadd.s32 %v284_v55, %v282_v54 }
  0x31   :  { %v108_v59 = vsel %vm106_vm5, %v107_v58, %v285_v56 }
  0x32   :  { %v109_v60 = vadd.s32 %v108_v59, %v104_v57 }
  0x34   :  { %v110_v61 = vadd.s32 536870912, %v109_v60 }
  0x36   :  { %v111_v62 = vshrl.u32 %v110_v61, 30 }
  0x38   :  { %v112_v63 = vshll.u32 %v111_v62, 30  ;;  %v135_v20 = vsub.s32 4, %v111_v62 }
  0x3a   :  { %v113_v0 = vsub.s32 %v109_v60, %v112_v63  ;;  %v136_v23 = vsel %vm51_vm7, %v135_v20, %v111_v62 }
  0x3b   :  { %v138_v25 = vsel %vm50_vm8, 0, %v136_v23 }
  0x3c   :  { %v115_v1 = vsub.s32 0, %v113_v0  ;;  %v142_v26 = vadd.s32 3, %v138_v25 }
  0x3e   :  { %v175_v2 = vmin.u32 %v115_v1, %v113_v0  ;;  %v143_v27 = vand.u32 3, %v142_v26 }
  0x40   :  { %v117_v3 = vclz %v175_v2  ;;  %vm148_vm9 = vcmp.eq.s32.totalorder %v143_v27, 2  ;;  %vm145_vm10 = vcmp.eq.s32.totalorder %v143_v27, 0  ;;  %vm144_vm11 = vcmp.lt.s32.totalorder %v143_v27, 2 }
  0x42   :  { %v176_v4 = vadd.s32 4294967294, %v117_v3 }
  0x44   :  { %vm177_vm6 = vcmp.lt.s32.totalorder %v176_v4, 0 }
  0x45   :  { %v120_v7 = vsel %vm177_vm6, 0, %v176_v4 }
  0x46   :  { %v121_v8 = vsub.s32 32, %v120_v7  ;;  %v122_v10 = vshll.u32 %v113_v0, %v120_v7  ;;  %v125_v11 = vsub.s32 4294967266, %v120_v7 }
  0x48   :  { %v123_v12 = vshrl.u32 %v105_v5, %v121_v8  ;;  %v126_v13 = vadd.s32 127, %v125_v11 }
  0x4a   :  { %v124_v14 = vor.u32 %v123_v12, %v122_v10  ;;  %v127_v15 = vshll.u32 %v126_v13, 23 }
  0x4c   :  { %v128_v16 = vor.u32 4788187, %v127_v15  ;;  %v131_v17 = vcvt.s32.f32 %v124_v14 }
  0x4e   :  { %v129_v18 = vand.u32 2147483647, %v128_v16 }
  0x50   :  { %v132_v19 = vmul.f32 %v131_v17, %v129_v18 }
  0x52   :  { %v133_v21 = vxor.u32 2147483648, %v132_v19 }
  0x54   :  { %v134_v22 = vsel %vm51_vm7, %v133_v21, %v132_v19 }
  0x55   :  { %v137_v24 = vsel %vm50_vm8, %v275_v6, %v134_v22 }
  0x56   :  { %190 = vcosq.f32 %v137_v24 }
  0x57   :  { %192 = vsinq.f32 %v137_v24 }
  0x63   :  { %v191_v28 = vpop.eup %190 }
  0x64   :  { %v193_v29 = vpop.eup %192  ;;  %v149_v30 = vxor.u32 2147483648, %v191_v28 }
  0x65   :  { %v146_v31 = vxor.u32 2147483648, %v193_v29 }
  0x66   :  { %v150_v9 = vsel %vm148_vm9, %v149_v30, %v193_v29 }
  0x67   :  { %v147_v32 = vsel %vm145_vm10, %v191_v28, %v146_v31 }
  0x68   :  { %v151_v34 = vsel %vm144_vm11, %v147_v32, %v150_v9 }
  0x69   :  { %v152_v35 = vsel %vm141_vm12, nan, %v151_v34 }
  0x6a   :  { %v154_v36 = vadd.f32 %v153_v33, %v152_v35 }
  0x6c   :  { %156 = vst.msk [vmem:[#allocation5] sm:$0xff] %vm155_vm13, %v154_v36 }
  0x6d   :  { %225 = shalt.err (!%p222_p9)
}
  0x6e   :  { %166 = dma.vmem_to_hbm [thread:$0]  %s164_s1, 128, %s302_s3, [#allocation4]  }
  0x6f   :  { %236 = dma.done.wait [#allocation4], 128  }
  0x70   :  { %237 = vsyncadd [#allocation4], 4294967168 }
  0x71   :  { %170 = vsyncpa [#allocation3], 1 }
  0x72   :  { %171 = vsyncpa [#allocation4], 1 }

</bundles_post_ra>
